<compile_context>
chip_gen: v7x
topology: tpu7x:2x2x1
jax: 0.10.0
libtpu: 0.0.40
codegen_flags: <defaults>
</compile_context>

<pallas_src>
import jax
import jax.numpy as jnp
from jax.experimental import pallas as pl
from jax.experimental.pallas import tpu as pltpu


# ----------------------------------------------------------------------------
# Kernel
# ----------------------------------------------------------------------------
def _cwdisc_kernel(x_ref, w1_ref, b1_ref, w2_ref, b2_ref, w3_ref, b3_ref, o_ref):
    # x_ref:  (TB, FC)    flattened input tile, index p = f*C + c (input dtype)
    # w1_ref: (FC, FCp)   block-diagonal packed weights (compute dtype)
    # b1_ref: (1, FCp)    f32
    # w2_ref: (FCp, FCp)  b2_ref: (1, FCp) f32
    # w3_ref: (FCp, NO)   grouped last layer, zero-padded cols; b3_ref: (1, NO) f32
    # o_ref:  (TB, NO)    lane-dense output block (NO = 128-multiple)
    cdt = w1_ref.dtype
    x = x_ref[...].astype(cdt)  # in-kernel cast: hidden under the matmuls

    h1 = jnp.dot(x, w1_ref[...], preferred_element_type=jnp.float32) + b1_ref[...]
    h1 = jnp.maximum(h1, 0.0).astype(cdt)   # elementwise math stays f32; cast only for MXU

    h2 = jnp.dot(h1, w2_ref[...], preferred_element_type=jnp.float32) + b2_ref[...]
    h2 = jnp.maximum(h2, 0.0).astype(cdt)

    out = jnp.dot(h2, w3_ref[...], preferred_element_type=jnp.float32) + b3_ref[...]
    o_ref[...] = out.astype(o_ref.dtype)


# ----------------------------------------------------------------------------
# Parameter handling
# ----------------------------------------------------------------------------
def _round_up(x, m):
    return ((x + m - 1) // m) * m


def init_params(key, num_features, num_classes):
    """Per-class raw weights. Convention: y = x @ W + b, W shaped (in, out)."""
    F, C = num_features, num_classes
    keys = jax.random.split(key, 6)
    scale = 1.0 / jnp.sqrt(jnp.float32(F))
    u = lambda k, s: jax.random.uniform(k, s, jnp.float32, -scale, scale)
    return {
        "w1": u(keys[0], (C, F, F)),
        "b1": u(keys[1], (C, F)),
        "w2": u(keys[2], (C, F, F)),
        "b2": u(keys[3], (C, F)),
        "w3": u(keys[4], (C, F)),
        "b3": u(keys[5], (C,)),
    }


def pack_params(raw, dtype=jnp.float32, lane=128):
    """Pack C class-MLPs into block-diagonal (interleaved) lane-dense weights.

    Packed index p(f, c) = f*C + c, so the (B, F, C) input only needs a
    row-major flatten (no transpose).  Hidden dims are zero-padded to FCp
    (multiple of `lane`) and the last-layer N dim to NO (multiple of `lane`)
    so all kernel loads/stores are full-lane.  Weights are cast to `dtype`
    (use jnp.bfloat16 on v6e/v7x); biases are kept in f32 since they are added
    to f32 accumulators.
    """
    w1, b1, w2, b2, w3, b3 = (
        raw["w1"], raw["b1"], raw["w2"], raw["b2"], raw["w3"], raw["b3"],
    )
    C, F, _ = w1.shape
    FC = F * C
    FCp = _round_up(FC, lane)
    NO = _round_up(C, lane)
    f32 = jnp.float32
    eye = jnp.eye(C, dtype=f32)

    def pack_ff(w):  # (C, F, F) -> (FC, FC): [f*C+c, g*C+d] = w[c,f,g]*delta(c,d)
        return jnp.einsum("cfg,cd->fcgd", w.astype(f32), eye).reshape(FC, FC)

    w1p = jnp.zeros((FC, FCp), f32).at[:, :FC].set(pack_ff(w1))
    w2p = jnp.zeros((FCp, FCp), f32).at[:FC, :FC].set(pack_ff(w2))
    w3flat = jnp.einsum("cf,cd->fcd", w3.astype(f32), eye).reshape(FC, C)
    w3p = jnp.zeros((FCp, NO), f32).at[:FC, :C].set(w3flat)

    b1p = jnp.zeros((1, FCp), f32).at[0, :FC].set(jnp.transpose(b1).reshape(FC))
    b2p = jnp.zeros((1, FCp), f32).at[0, :FC].set(jnp.transpose(b2).reshape(FC))
    b3p = jnp.zeros((1, NO), f32).at[0, :C].set(b3.astype(f32))

    return {
        "w1": w1p.astype(dtype),
        "w2": w2p.astype(dtype),
        "w3": w3p.astype(dtype),
        "b1": b1p,  # biases stay f32 (added to f32 accumulators)
        "b2": b2p,
        "b3": b3p,
    }


# ----------------------------------------------------------------------------
# Wrapper
# ----------------------------------------------------------------------------
def _resident_spec(shape):
    """BlockSpec for a block that never changes across the grid.

    Single-buffered (Buffered(1)) to halve resident weight VMEM; falls back to
    a plain spec on JAX versions without pipeline_mode.
    """
    idx = lambda i: (0,) * len(shape)
    try:
        return pl.BlockSpec(shape, idx, pipeline_mode=pl.Buffered(1))
    except TypeError:
        return pl.BlockSpec(shape, idx)


def _choose_tb(B):
    """Batch tile: single block for small B; otherwise up to 512 rows,
    multiple of 8, with >= 2 grid steps so v7x's two TCs both get work."""
    if B <= 128:
        return B, 1
    tb = min(512, pl.cdiv(B, 2))
    tb = max(8, (tb // 8) * 8)
    return tb, pl.cdiv(B, tb)


def _vmem_limit_bytes(TB, FC, FCp, NO, w_itemsize):
    x_buf = 2 * TB * FC * 4                                    # x tiles, double-buffered (f32 in)
    w_buf = (FC * FCp + FCp * FCp + FCp * NO) * w_itemsize     # resident packed weights
    b_buf = (2 * FCp + NO) * 4                                 # f32 biases
    o_buf = 2 * TB * NO * 4                                    # output tiles, double-buffered
    act = 2 * TB * FCp * 4                                     # h1/h2 f32 live intermediates
    # 2x on weights in case Buffered(1) is unavailable and they double-buffer.
    need = x_buf + 2 * (w_buf + b_buf) + o_buf + act
    if need > 60 * 1024 * 1024:
        # TODO(synk): class-blocked batched-einsum fallback for very large F*C.
        raise ValueError(
            f"Packed CWDiscriminator weights need ~{need >> 20} MiB VMEM; "
            "exceeds v7x budget. Reduce F*C or use a class-blocked path."
        )
    return int(min(max(2 * need, 32 * 1024 * 1024), 64 * 1024 * 1024))


def cw_discriminator(x, packed):
    """x: (B, F, C) float32. packed: output of pack_params(). Returns (B, C)."""
    B, F, C = x.shape
    FC = F * C
    FCp = packed["w2"].shape[0]
    NO = packed["w3"].shape[1]
    assert packed["w1"].shape == (FC, FCp), (packed["w1"].shape, FC, FCp)

    # Metadata-only flatten (row-major -> index p = f*C + c). No wrapper cast:
    # the dtype cast happens inside the kernel, hidden under the matmuls.
    x2 = x.reshape(B, FC)

    TB, n_b = _choose_tb(B)
    # Ragged last batch tile (B % TB != 0) is handled by Pallas boundary
    # masking: OOB reads feed rows whose OOB writes are dropped. No jnp.pad.

    vmem_limit = _vmem_limit_bytes(TB, FC, FCp, NO, packed["w1"].dtype.itemsize)

    out = pl.pallas_call(
        _cwdisc_kernel,
        out_shape=jax.ShapeDtypeStruct((B, NO), jnp.float32),
        grid=(n_b,),
        in_specs=[
            pl.BlockSpec((TB, FC), lambda i: (i, 0)),   # x tile (streamed)
            _resident_spec((FC, FCp)),                  # w1 (resident across B tiles)
            _resident_spec((1, FCp)),                   # b1
            _resident_spec((FCp, FCp)),                 # w2
            _resident_spec((1, FCp)),                   # b2
            _resident_spec((FCp, NO)),                  # w3 (grouped across classes)
            _resident_spec((1, NO)),                    # b3
        ],
        out_specs=pl.BlockSpec((TB, NO), lambda i: (i, 0)),  # lane-dense output
        compiler_params=pltpu.CompilerParams(
            dimension_semantics=("parallel",),
            vmem_limit_bytes=vmem_limit,
        ),
    )(x2, packed["w1"], packed["b1"], packed["w2"], packed["b2"],
      packed["w3"], packed["b3"])

    return out[:, :C]


# ----------------------------------------------------------------------------
# Pure-JAX reference of the PyTorch forward (from unpacked params)
# ----------------------------------------------------------------------------
def _reference(x, raw):
    B, F, C = x.shape
    outs = []
    for c in range(C):
        xi = x[:, :, c]                                              # (B, F)
        h1 = jnp.maximum(xi @ raw["w1"][c] + raw["b1"][c], 0.0)
        h2 = jnp.maximum(h1 @ raw["w2"][c] + raw["b2"][c], 0.0)
        o = h2 @ raw["w3"][c] + raw["b3"][c]                         # (B,)
        outs.append(o)
    return jnp.stack(outs, axis=1)                                   # (B, C)


if __name__ == "__main__":
    num_features = 32
    num_classes = 4
    batch = 2

    key = jax.random.PRNGKey(0)
    k_x, k_p = jax.random.split(key)

    x = jax.random.normal(k_x, (batch, num_features, num_classes), jnp.float32)
    raw_params = init_params(k_p, num_features, num_classes)
    ref = jax.block_until_ready(_reference(x, raw_params))

    fwd = jax.jit(cw_discriminator)

    # f32 path: exact parity with the PyTorch-style reference.
    packed_f32 = pack_params(raw_params, dtype=jnp.float32)
    out_f32 = jax.block_until_ready(fwd(x, packed_f32))
    assert out_f32.shape == (batch, num_classes), out_f32.shape
    assert jnp.allclose(out_f32, ref, atol=1e-4, rtol=1e-4), (out_f32, ref)

    # bf16 weight/activation path (recommended on v6e/v7x): f32 accumulation.
    packed_bf16 = pack_params(raw_params, dtype=jnp.bfloat16)
    out_bf16 = jax.block_until_ready(fwd(x, packed_bf16))
    assert out_bf16.shape == (batch, num_classes), out_bf16.shape
    assert jnp.allclose(out_bf16, ref, atol=5e-2, rtol=5e-2), (out_bf16, ref)

    print("KERNEL_OK")
</pallas_src>

<mosaic_0001>
module attributes {stable_mosaic.version = 11 : i64} {
  func.func @_cwdisc_kernel(%arg0: i32, %arg1: memref<2x128xf32, #tpu.memory_space<vmem>>, %arg2: memref<128x128xf32, #tpu.memory_space<vmem>>, %arg3: memref<1x128xf32, #tpu.memory_space<vmem>>, %arg4: memref<128x128xf32, #tpu.memory_space<vmem>>, %arg5: memref<1x128xf32, #tpu.memory_space<vmem>>, %arg6: memref<128x128xf32, #tpu.memory_space<vmem>>, %arg7: memref<1x128xf32, #tpu.memory_space<vmem>>, %arg8: memref<2x128xf32, #tpu.memory_space<vmem>>) attributes {dimension_semantics = [#tpu.dimension_semantics<parallel>], iteration_bounds = array<i64: 1>, scalar_prefetch = 0 : i64, scratch_operands = 0 : i64, tpu.core_type = #tpu.core_type<tc>, window_params = [{transform_indices = @transform_0, window_bounds = array<i64: 2, 128>}, {pipeline_mode = #tpu.pipeline_mode<synchronous>, transform_indices = @transform_1, window_bounds = array<i64: 128, 128>}, {pipeline_mode = #tpu.pipeline_mode<synchronous>, transform_indices = @transform_2, window_bounds = array<i64: 1, 128>}, {pipeline_mode = #tpu.pipeline_mode<synchronous>, transform_indices = @transform_3, window_bounds = array<i64: 128, 128>}, {pipeline_mode = #tpu.pipeline_mode<synchronous>, transform_indices = @transform_4, window_bounds = array<i64: 1, 128>}, {pipeline_mode = #tpu.pipeline_mode<synchronous>, transform_indices = @transform_5, window_bounds = array<i64: 128, 128>}, {pipeline_mode = #tpu.pipeline_mode<synchronous>, transform_indices = @transform_6, window_bounds = array<i64: 1, 128>}, {transform_indices = @transform_7, window_bounds = array<i64: 2, 128>}]} {
    %c0 = arith.constant 0 : index
    %c0_0 = arith.constant 0 : index
    %0 = vector.load %arg1[%c0, %c0_0] : memref<2x128xf32, #tpu.memory_space<vmem>>, vector<2x128xf32>
    %c0_1 = arith.constant 0 : index
    %c0_2 = arith.constant 0 : index
    %1 = vector.load %arg2[%c0_1, %c0_2] : memref<128x128xf32, #tpu.memory_space<vmem>>, vector<128x128xf32>
    %cst = arith.constant dense<0.000000e+00> : vector<2x128xf32>
    %2 = tpu.matmul %0, %1, %cst {dimension_numbers = #tpu.dot_dimension_numbers<[1], [0], [0], [1], [0, 0, 1, 1], [], []>} : vector<2x128xf32>, vector<128x128xf32>, vector<2x128xf32> -> vector<2x128xf32>
    %c0_3 = arith.constant 0 : index
    %c0_4 = arith.constant 0 : index
    %3 = vector.load %arg3[%c0_3, %c0_4] : memref<1x128xf32, #tpu.memory_space<vmem>>, vector<1x128xf32>
    %4 = vector.broadcast %3 : vector<1x128xf32> to vector<2x128xf32>
    %5 = arith.addf %2, %4 : vector<2x128xf32>
    %cst_5 = arith.constant 0.000000e+00 : f32
    %6 = vector.broadcast %cst_5 : f32 to vector<2x128xf32>
    %7 = arith.maximumf %5, %6 : vector<2x128xf32>
    %c0_6 = arith.constant 0 : index
    %c0_7 = arith.constant 0 : index
    %8 = vector.load %arg4[%c0_6, %c0_7] : memref<128x128xf32, #tpu.memory_space<vmem>>, vector<128x128xf32>
    %cst_8 = arith.constant dense<0.000000e+00> : vector<2x128xf32>
    %9 = tpu.matmul %7, %8, %cst_8 {dimension_numbers = #tpu.dot_dimension_numbers<[1], [0], [0], [1], [0, 0, 1, 1], [], []>} : vector<2x128xf32>, vector<128x128xf32>, vector<2x128xf32> -> vector<2x128xf32>
    %c0_9 = arith.constant 0 : index
    %c0_10 = arith.constant 0 : index
    %10 = vector.load %arg5[%c0_9, %c0_10] : memref<1x128xf32, #tpu.memory_space<vmem>>, vector<1x128xf32>
    %11 = vector.broadcast %10 : vector<1x128xf32> to vector<2x128xf32>
    %12 = arith.addf %9, %11 : vector<2x128xf32>
    %cst_11 = arith.constant 0.000000e+00 : f32
    %13 = vector.broadcast %cst_11 : f32 to vector<2x128xf32>
    %14 = arith.maximumf %12, %13 : vector<2x128xf32>
    %c0_12 = arith.constant 0 : index
    %c0_13 = arith.constant 0 : index
    %15 = vector.load %arg6[%c0_12, %c0_13] : memref<128x128xf32, #tpu.memory_space<vmem>>, vector<128x128xf32>
    %cst_14 = arith.constant dense<0.000000e+00> : vector<2x128xf32>
    %16 = tpu.matmul %14, %15, %cst_14 {dimension_numbers = #tpu.dot_dimension_numbers<[1], [0], [0], [1], [0, 0, 1, 1], [], []>} : vector<2x128xf32>, vector<128x128xf32>, vector<2x128xf32> -> vector<2x128xf32>
    %c0_15 = arith.constant 0 : index
    %c0_16 = arith.constant 0 : index
    %17 = vector.load %arg7[%c0_15, %c0_16] : memref<1x128xf32, #tpu.memory_space<vmem>>, vector<1x128xf32>
    %18 = vector.broadcast %17 : vector<1x128xf32> to vector<2x128xf32>
    %19 = arith.addf %16, %18 : vector<2x128xf32>
    %c0_17 = arith.constant 0 : index
    %c0_18 = arith.constant 0 : index
    %20 = vector.load %arg8[%c0_17, %c0_18] : memref<2x128xf32, #tpu.memory_space<vmem>>, vector<2x128xf32>
    tpu.vector_store %arg8[%c0_17, %c0_18], %19 {strides = array<i32>} : memref<2x128xf32, #tpu.memory_space<vmem>>, vector<2x128xf32>,
    return
  }
  func.func @transform_0(%arg0: i32) -> (i32, i32) {
    %c0_i32 = arith.constant 0 : i32
    %c0_i32_0 = arith.constant 0 : i32
    return %arg0, %c0_i32 : i32, i32
  }
  func.func @transform_1(%arg0: i32) -> (i32, i32) {
    %c0_i32 = arith.constant 0 : i32
    %c0_i32_0 = arith.constant 0 : i32
    %c0_i32_1 = arith.constant 0 : i32
    return %c0_i32, %c0_i32_0 : i32, i32
  }
  func.func @transform_2(%arg0: i32) -> (i32, i32) {
    %c0_i32 = arith.constant 0 : i32
    %c0_i32_0 = arith.constant 0 : i32
    %c0_i32_1 = arith.constant 0 : i32
    return %c0_i32, %c0_i32_0 : i32, i32
  }
  func.func @transform_3(%arg0: i32) -> (i32, i32) {
    %c0_i32 = arith.constant 0 : i32
    %c0_i32_0 = arith.constant 0 : i32
    %c0_i32_1 = arith.constant 0 : i32
    return %c0_i32, %c0_i32_0 : i32, i32
  }
  func.func @transform_4(%arg0: i32) -> (i32, i32) {
    %c0_i32 = arith.constant 0 : i32
    %c0_i32_0 = arith.constant 0 : i32
    %c0_i32_1 = arith.constant 0 : i32
    return %c0_i32, %c0_i32_0 : i32, i32
  }
  func.func @transform_5(%arg0: i32) -> (i32, i32) {
    %c0_i32 = arith.constant 0 : i32
    %c0_i32_0 = arith.constant 0 : i32
    %c0_i32_1 = arith.constant 0 : i32
    return %c0_i32, %c0_i32_0 : i32, i32
  }
  func.func @transform_6(%arg0: i32) -> (i32, i32) {
    %c0_i32 = arith.constant 0 : i32
    %c0_i32_0 = arith.constant 0 : i32
    %c0_i32_1 = arith.constant 0 : i32
    return %c0_i32, %c0_i32_0 : i32, i32
  }
  func.func @transform_7(%arg0: i32) -> (i32, i32) {
    %c0_i32 = arith.constant 0 : i32
    %c0_i32_0 = arith.constant 0 : i32
    return %arg0, %c0_i32 : i32, i32
  }
}

</mosaic_0001>

<bundles_post_ra>
// kernel: cw_discriminator.1
= control target key start
LH: loop header
LB: loop body
LE: loop exit
PB: predicated region body
PF: predicated region fallthrough
CT: control target
= control target key end

     0   :  { %12 = vsyncpa [#allocation3], 0  ;;  %s839_s0 = inlined_call_operand.vmem [shape: f32[2,128], index: 0, kind: input, shape index: {}]   ;;  %s840_s1 = inlined_call_operand.vmem [shape: f32[128,128], index: 1, kind: input, shape index: {}]   ;;  %s841_s2 = inlined_call_operand.vmem [shape: f32[1,128], index: 2, kind: input, shape index: {}]   ;;  %s842_s3 = inlined_call_operand.hbm [shape: f32[128,128], index: 3, kind: input, shape index: {}]   ;;  %s843_s4 = inlined_call_operand.vmem [shape: f32[1,128], index: 4, kind: input, shape index: {}]   ;;  %s844_s5 = inlined_call_operand.hbm [shape: f32[128,128], index: 5, kind: input, shape index: {}]   ;;  %s845_s6 = inlined_call_operand.vmem [shape: f32[1,128], index: 6, kind: input, shape index: {}]   ;;  %s846_s7 = inlined_call_operand.hbm [shape: f32[2,128], index: 7, kind: output, shape index: {}]  }
   0x1   :  { %13 = vsyncpa [#allocation6], 0 }
   0x2   :  { %14 = vsyncpa [#allocation4], 0  ;;  %s665_s24 = smov [#allocation2]   ;;  %s593_s28 = scalar_lea.hbm %s842_s3, 2048 }
   0x3   :  { %s26_s25 = sshll.u32 %s665_s24, 4  ;;  %p594_p0 = scmp.ne.s32.totalorder %s842_s3, %s593_s28  ;;  %s27_s25 = int_to_ptr.vmem [resolvable:$true] %s26_s25 }
   0x4   :  { %p597_p1 = scmp.lt.u32.totalorder %s593_s28, %s842_s3 }
   0x6   :  { %p599_p2 = pnand %p597_p1, %p594_p0 }
   0x8   :  { %602 = shalt.err (!%p599_p2)
}
   0x9   :  { %s603_s10 = scalar_lea.vmem %s27_s25, 2048  ;;  %p608_p4 = scmp.lt.s32.totalorder %s27_s25, %s27_s25 }
   0xa   :  { %p604_p3 = scmp.ne.s32.totalorder %s27_s25, %s603_s10  ;;  %p609_p5 = scmp.lt.s32.totalorder %s603_s10, %s603_s10 }
   0xc   :  { %p610_p6 = por %p609_p5, %p608_p4 }
   0xe   :  { %p611_p7 = pnand %p610_p6, %p604_p3 }
  0x10   :  { %614 = shalt.err (!%p611_p7)
}
  0x11   :  { %s666_s11 = smov 128   ;;  %s667_s12 = smov 8  }
  0x12   :  { %32 = dma.hbm_to_vmem [thread:$0]  %s842_s3, 2048, %s27_s25, [#allocation3], %s666_s11, %s666_s11, %s667_s12  }
  0x13   :  { %s668_s15 = smov [#allocation5]   ;;  %s615_s19 = scalar_lea.hbm %s844_s5, 2048 }
  0x14   :  { %s40_s16 = sshll.u32 %s668_s15, 4  ;;  %p616_p8 = scmp.ne.s32.totalorder %s844_s5, %s615_s19  ;;  %s41_s16 = int_to_ptr.vmem [resolvable:$true] %s40_s16 }
  0x15   :  { %p619_p9 = scmp.lt.u32.totalorder %s615_s19, %s844_s5 }
  0x17   :  { %p621_p10 = pnand %p619_p9, %p616_p8 }
  0x19   :  { %624 = shalt.err (!%p621_p10)
}
  0x1a   :  { %s625_s24 = scalar_lea.vmem %s41_s16, 2048  ;;  %p630_p12 = scmp.lt.s32.totalorder %s41_s16, %s41_s16 }
  0x1b   :  { %p626_p11 = scmp.ne.s32.totalorder %s41_s16, %s625_s24  ;;  %p631_p13 = scmp.lt.s32.totalorder %s625_s24, %s625_s24 }
  0x1d   :  { %p632_p0 = por %p631_p13, %p630_p12 }
  0x1f   :  { %p633_p1 = pnand %p632_p0, %p626_p11 }
  0x21   :  { %636 = shalt.err (!%p633_p1)
}
  0x22   :  { %46 = dma.hbm_to_vmem [thread:$0]  %s844_s5, 2048, %s41_s16, [#allocation6], %s666_s11, %s666_s11, %s667_s12  }
  0x23   :  { %659 = dma.done.wait [#allocation3], 2048  }
  0x24   :  { %660 = vsyncadd [#allocation3], 4294965248 }
  0x25   :  { %661 = dma.done.wait [#allocation6], 2048  }
  0x26   :  { %662 = vsyncadd [#allocation6], 4294965248  ;;  %v669_v0 = vmov 0.0|0.0   ;;  %vm670_vm0 = vmmov 0   ;;  %v671_v1 = vmov 0.0   ;;  %v56_v2 = vld [vmem:[%s840_s1] sm:$0xff] }
  0x27   :  { %513 = vmatprep.subr.bf16.mxu0 %v669_v0  ;;  %440 = vmatprep.mubr.msk.f32.mxu0 %vm670_vm0, %v671_v1  ;;  %v57_v3 = vld [vmem:[%s840_s1 + $0x8] sm:$0xff]  ;;  %v58_v4 = vld [vmem:[%s840_s1 + $0x10] sm:$0xff]  ;;  %v59_v6 = vld [vmem:[%s840_s1 + $0x18] sm:$0xff]  ;;  %s672_s14 = smov [#allocation7]  }
  0x28   :  { %537 = vmatprep.subr.bf16.mxu1 %v669_v0  ;;  %475 = vmatprep.mubr.msk.f32.mxu1 %vm670_vm0, %v671_v1  ;;  %v514_v5 = vpack.c.bf16 %v57_v3, %v56_v2  ;;  %v517_v7 = vpack.c.bf16 %v59_v6, %v58_v4  ;;  %v60_v8 = vld [vmem:[%s840_s1 + $0x20] sm:$0xff]  ;;  %v61_v9 = vld [vmem:[%s840_s1 + $0x28] sm:$0xff]  ;;  %v152_v12 = vld [vmem:[#allocation2 + $0x10] sm:$0xff]  ;;  %s344_s15 = sshll.u32 %s672_s14, 4  ;;  %s345_s15 = int_to_ptr.vmem [resolvable:$true] %s344_s15 }
  0x29   :  { %v150_v10 = vld [vmem:[#allocation2] sm:$0xff]  ;;  %v151_v11 = vld [vmem:[#allocation2 + $0x8] sm:$0xff]  ;;  %v153_v13 = vld [vmem:[#allocation2 + $0x18] sm:$0xff]  ;;  %v520_v14 = vpack.c.bf16 %v61_v9, %v60_v8  ;;  %s637_s16 = scalar_lea.vmem %s345_s15, 32  ;;  %p642_p3 = scmp.lt.s32.totalorder %s345_s15, %s345_s15 }
  0x2a   :  { %515 = vmatpush3.bf16.msra.mxu0 %v514_v5  ;;  %v538_v15 = vpack.c.bf16 %v151_v11, %v150_v10  ;;  %v62_v16 = vld [vmem:[%s840_s1 + $0x30] sm:$0xff]  ;;  %v63_v17 = vld [vmem:[%s840_s1 + $0x38] sm:$0xff]  ;;  %v541_v18 = vpack.c.bf16 %v153_v13, %v152_v12  ;;  %v154_v19 = vld [vmem:[#allocation2 + $0x20] sm:$0xff]  ;;  %p638_p2 = scmp.ne.s32.totalorder %s345_s15, %s637_s16  ;;  %p643_p4 = scmp.lt.s32.totalorder %s637_s16, %s637_s16 }
  0x2b   :  { %516 = vmatprep.subr.bf16.mxu0 %v669_v0  ;;  %v155_v20 = vld [vmem:[#allocation2 + $0x28] sm:$0xff]  ;;  %v523_v21 = vpack.c.bf16 %v63_v17, %v62_v16  ;;  %v64_v22 = vld [vmem:[%s840_s1 + $0x40] sm:$0xff]  ;;  %v156_v25 = vld [vmem:[#allocation2 + $0x30] sm:$0xff] }
  0x2c   :  { %539 = vmatpush3.bf16.msra.mxu1 %v538_v15  ;;  %v65_v23 = vld [vmem:[%s840_s1 + $0x48] sm:$0xff]  ;;  %v544_v24 = vpack.c.bf16 %v155_v20, %v154_v19  ;;  %v157_v26 = vld [vmem:[#allocation2 + $0x38] sm:$0xff]  ;;  %v66_v28 = vld [vmem:[%s840_s1 + $0x50] sm:$0xff]  ;;  %p644_p5 = por %p643_p4, %p642_p3 }
  0x2d   :  { %540 = vmatprep.subr.bf16.mxu1 %v669_v0  ;;  %v526_v27 = vpack.c.bf16 %v65_v23, %v64_v22  ;;  %v67_v29 = vld [vmem:[%s840_s1 + $0x58] sm:$0xff]  ;;  %v547_v30 = vpack.c.bf16 %v157_v26, %v156_v25  ;;  %v158_v31 = vld [vmem:[#allocation2 + $0x40] sm:$0xff]  ;;  %v159_v32 = vld [vmem:[#allocation2 + $0x48] sm:$0xff] }
  0x2e   :  { %518 = vmatpush3.bf16.msra.mxu0 %v517_v7  ;;  %v529_v33 = vpack.c.bf16 %v67_v29, %v66_v28  ;;  %v68_v34 = vld [vmem:[%s840_s1 + $0x60] sm:$0xff]  ;;  %v69_v35 = vld [vmem:[%s840_s1 + $0x68] sm:$0xff]  ;;  %v550_v36 = vpack.c.bf16 %v159_v32, %v158_v31  ;;  %v160_v37 = vld [vmem:[#allocation2 + $0x50] sm:$0xff]  ;;  %p645_p6 = pnand %p644_p5, %p638_p2 }
  0x2f   :  { %519 = vmatprep.subr.bf16.mxu0 %v669_v0  ;;  %v161_v38 = vld [vmem:[#allocation2 + $0x58] sm:$0xff]  ;;  %v532_v39 = vpack.c.bf16 %v69_v35, %v68_v34  ;;  %v70_v40 = vld [vmem:[%s840_s1 + $0x70] sm:$0xff]  ;;  %v162_v43 = vld [vmem:[#allocation2 + $0x60] sm:$0xff] }
  0x30   :  { %542 = vmatpush3.bf16.msra.mxu1 %v541_v18  ;;  %v71_v41 = vld [vmem:[%s840_s1 + $0x78] sm:$0xff]  ;;  %v553_v42 = vpack.c.bf16 %v161_v38, %v160_v37  ;;  %v163_v44 = vld [vmem:[#allocation2 + $0x68] sm:$0xff]  ;;  %v55_v47 = vld [vmem:[%s839_s0] sm:$0x3] }
  0x31   :  { %543 = vmatprep.subr.bf16.mxu1 %v669_v0  ;;  %v535_v45 = vpack.c.bf16 %v71_v41, %v70_v40  ;;  %v556_v46 = vpack.c.bf16 %v163_v44, %v162_v43  ;;  %v164_v48 = vld [vmem:[#allocation2 + $0x70] sm:$0xff]  ;;  %v165_v49 = vld [vmem:[#allocation2 + $0x78] sm:$0xff]  ;;  %v244_v51 = vld [vmem:[#allocation5] sm:$0xff] }
  0x32   :  { %521 = vmatpush3.bf16.msra.mxu0 %v520_v14  ;;  %v559_v50 = vpack.c.bf16 %v165_v49, %v164_v48  ;;  %v245_v52 = vld [vmem:[#allocation5 + $0x8] sm:$0xff]  ;;  %v246_v53 = vld [vmem:[#allocation5 + $0x10] sm:$0xff]  ;;  %v247_v55 = vld [vmem:[#allocation5 + $0x18] sm:$0xff] }
  0x33   :  { %522 = vmatprep.subr.bf16.mxu0 %v669_v0  ;;  %v562_v54 = vpack.c.bf16 %v245_v52, %v244_v51  ;;  %v565_v56 = vpack.c.bf16 %v247_v55, %v246_v53  ;;  %v248_v57 = vld [vmem:[#allocation5 + $0x20] sm:$0xff]  ;;  %v249_v58 = vld [vmem:[#allocation5 + $0x28] sm:$0xff]  ;;  %v250_v60 = vld [vmem:[#allocation5 + $0x30] sm:$0xff] }
  0x34   :  { %545 = vmatpush3.bf16.msra.mxu1 %v544_v24  ;;  %v568_v59 = vpack.c.bf16 %v249_v58, %v248_v57  ;;  %v251_v61 = vld [vmem:[#allocation5 + $0x38] sm:$0xff]  ;;  %v252_v63 = vld [vmem:[#allocation5 + $0x40] sm:$0xff]  ;;  %v254_v3 = vld [vmem:[#allocation5 + $0x50] sm:$0xff] }
  0x35   :  { %546 = vmatprep.subr.bf16.mxu1 %v669_v0  ;;  %v571_v62 = vpack.c.bf16 %v251_v61, %v250_v60  ;;  %v255_v4 = vld [vmem:[#allocation5 + $0x58] sm:$0xff]  ;;  %v256_v6 = vld [vmem:[#allocation5 + $0x60] sm:$0xff]  ;;  %v257_v7 = vld [vmem:[#allocation5 + $0x68] sm:$0xff] }
  0x36   :  { %524 = vmatpush3.bf16.msra.mxu0 %v523_v21  ;;  %v577_v5 = vpack.c.bf16 %v255_v4, %v254_v3  ;;  %v580_v8 = vpack.c.bf16 %v257_v7, %v256_v6  ;;  %v354_v9 = vld [vmem:[%s841_s2] ss:$0 sm:$0xff]  ;;  %v258_v14 = vld [vmem:[#allocation5 + $0x70] sm:$0xff]  ;;  %v259_v15 = vld [vmem:[#allocation5 + $0x78] sm:$0xff] }
  0x37   :  { %525 = vmatprep.subr.bf16.mxu0 %v669_v0  ;;  %v583_v16 = vpack.c.bf16 %v259_v15, %v258_v14  ;;  %v355_v17 = vld [vmem:[%s843_s4] ss:$0 sm:$0xff] }
  0x38   :  { %548 = vmatpush3.bf16.msra.mxu1 %v547_v30  ;;  %v356_v21 = vld [vmem:[%s845_s6] ss:$0 sm:$0xff] }
  0x39   :  { %549 = vmatprep.subr.bf16.mxu1 %v669_v0 }
  0x3a   :  { %527 = vmatpush3.bf16.msra.mxu0 %v526_v27 }
  0x3b   :  { %528 = vmatprep.subr.bf16.mxu0 %v669_v0 }
  0x3c   :  { %551 = vmatpush3.bf16.msra.mxu1 %v550_v36 }
  0x3d   :  { %552 = vmatprep.subr.bf16.mxu1 %v669_v0 }
  0x3e   :  { %530 = vmatpush3.bf16.msra.mxu0 %v529_v33 }
  0x3f   :  { %531 = vmatprep.subr.bf16.mxu0 %v669_v0 }
  0x40   :  { %554 = vmatpush3.bf16.msra.mxu1 %v553_v42 }
  0x41   :  { %555 = vmatprep.subr.bf16.mxu1 %v669_v0 }
  0x42   :  { %533 = vmatpush3.bf16.msra.mxu0 %v532_v39 }
  0x43   :  { %534 = vmatprep.subr.bf16.mxu0 %v669_v0 }
  0x44   :  { %557 = vmatpush3.bf16.msra.mxu1 %v556_v46 }
  0x45   :  { %558 = vmatprep.subr.bf16.mxu1 %v669_v0 }
  0x46   :  { %536 = vmatpush3.bf16.msra.mxu0 %v535_v45 }
  0x47   :  { %561 = vmatprep.subr.bf16.mxu0 %v669_v0 }
  0x48   :  { %560 = vmatpush3.bf16.msra.mxu1 %v559_v50 }
  0x49   :  { %441 = vmatmul.mubr.f32.vlgmr.msra.gmra.mrb[0].mxu0 %v55_v47 }
  0x4a   :  { %510 = vmatprep.mubr.msk.f32.mxu0 %vm670_vm0, %v671_v1  ;;  %563 = vmatpush3.bf16.msra.mxu0 %v562_v54  ;;  %v253_v1 = vld [vmem:[#allocation5 + $0x48] sm:$0xff] }
  0x4b   :  { %564 = vmatprep.subr.bf16.mxu0 %v669_v0  ;;  %v574_v2 = vpack.c.bf16 %v253_v1, %v252_v63 }
  0x4e   :  { %566 = vmatpush3.bf16.msra.mxu0 %v565_v56 }
  0x4f   :  { %567 = vmatprep.subr.bf16.mxu0 %v669_v0 }
  0x52   :  { %569 = vmatpush3.bf16.msra.mxu0 %v568_v59 }
  0x53   :  { %570 = vmatprep.subr.bf16.mxu0 %v669_v0 }
  0x56   :  { %572 = vmatpush3.bf16.msra.mxu0 %v571_v62 }
  0x57   :  { %573 = vmatprep.subr.bf16.mxu0 %v669_v0 }
  0x5a   :  { %575 = vmatpush3.bf16.msra.mxu0 %v574_v2 }
  0x5b   :  { %576 = vmatprep.subr.bf16.mxu0 %v669_v0 }
  0x5e   :  { %578 = vmatpush3.bf16.msra.mxu0 %v577_v5 }
  0x5f   :  { %579 = vmatprep.subr.bf16.mxu0 %v669_v0 }
  0x62   :  { %581 = vmatpush3.bf16.msra.mxu0 %v580_v8 }
  0x63   :  { %582 = vmatprep.subr.bf16.mxu0 %v669_v0 }
  0x66   :  { %584 = vmatpush3.bf16.msra.mxu0 %v583_v16 }
 0x11c   :  { %v145_v10 = vpop.f32.mrb[0].mxu0 }
 0x11d   :  { %v146_v11 = vadd.f32 %v354_v9, %v145_v10  ;;  %v442_v12 = vpop.f32.mrb[1].mxu0 }
 0x11f   :  { %v149_v13 = vmax.f32 %v146_v11, 0.0 }
 0x121   :  { %476 = vmatmul.mubr.f32.vlgmr.msra.gmra.mrb[0].mxu1 %v149_v13 }
 0x1f4   :  { %v239_v18 = vpop.f32.mrb[0].mxu1 }
 0x1f5   :  { %v240_v19 = vadd.f32 %v355_v17, %v239_v18  ;;  %v477_v0 = vpop.f32.mrb[1].mxu1 }
 0x1f7   :  { %v243_v20 = vmax.f32 %v240_v19, 0.0 }
 0x1f9   :  { %511 = vmatmul.mubr.f32.vlgmr.msra.gmra.mrb[2].mxu0 %v243_v20 }
 0x2cc   :  { %v333_v22 = vpop.f32.mrb[2].mxu0 }
 0x2cd   :  { %v334_v23 = vadd.f32 %v356_v21, %v333_v22  ;;  %v512_v24 = vpop.f32.mrb[3].mxu0 }
 0x2cf   :  { %337 = vst [vmem:[#allocation7] sm:$0x3] %v334_v23 }
 0x2d0   :  { %648 = shalt.err (!%p645_p6)
}
 0x2d1   :  { %s649_s18 = scalar_lea.hbm %s846_s7, 32 }
 0x2d2   :  { %p650_p7 = scmp.ne.s32.totalorder %s846_s7, %s649_s18  ;;  %p653_p8 = scmp.lt.u32.totalorder %s649_s18, %s846_s7 }
 0x2d4   :  { %p655_p9 = pnand %p653_p8, %p650_p7 }
 0x2d6   :  { %658 = shalt.err (!%p655_p9)
}
 0x2d7   :  { %347 = dma.vmem_to_hbm [thread:$0]  %s345_s15, 32, %s846_s7, [#allocation4]  }
 0x2d8   :  { %663 = dma.done.wait [#allocation4], 32  }
 0x2d9   :  { %664 = vsyncadd [#allocation4], 4294967264 }
 0x2da   :  { %351 = vsyncpa [#allocation3], 1 }
 0x2db   :  { %352 = vsyncpa [#allocation6], 1 }
 0x2dc   :  { %353 = vsyncpa [#allocation4], 1 }

</bundles_post_ra>
